<compile_context>
chip_gen: v7x
topology: tpu7x:2x2x1
jax: 0.10.0
libtpu: 0.0.40
codegen_flags: <defaults>
</compile_context>

<pallas_src>
import jax
import jax.numpy as jnp
from jax.experimental import pallas as pl
from jax.experimental.pallas import tpu as pltpu


def _round_up(x, m):
    return ((x + m - 1) // m) * m


def _choose_batch_tile(B, b_tile):
    """Pick the batch tile bt (static Python int)."""
    if B <= 256:
        # One block; only round up to a sublane multiple.
        return max(8, _round_up(B, 8))
    # Large batch: tile is a multiple of 128 (v5e MXU M tile), capped at
    # b_tile, and sized so there are >= 2 grid steps — the "parallel" batch
    # axis then shards across both v7x TensorCores.
    b_tile = max(128, _round_up(b_tile, 128))
    return max(128, min(b_tile, _round_up(pl.cdiv(B, 2), 128)))


def actor_forward_kernel(
    x_ref,    # [bt, D_in]   f32
    w1_ref,   # [D_in, F1]   compute dtype
    b1_ref,   # [1, F1]      f32
    w2_ref,   # [F1, F2]     compute dtype
    b2_ref,   # [1, F2]      f32
    wh_ref,   # [F2, N_pad]  compute dtype, packed+padded [Wmu | Wsig | 0...]
    bh_ref,   # [1, N_pad]   f32,           packed+padded [bmu | bsig | 0...]
    lo_ref,   # [1, N_pad]   f32 per-lane lower clamp bound (-inf on mu lanes)
    hi_ref,   # [1, N_pad]   f32 per-lane upper clamp bound (+inf on mu lanes)
    out_ref,  # [bt, N_pad]  packed output [mu | clamped sigma | junk]
):
    cd = w1_ref.dtype

    # fc1 + relu  (MXU matmul, f32 accumulation; bias/ReLU on the VPU in f32)
    x = x_ref[...].astype(cd)
    h1 = jnp.dot(x, w1_ref[...], preferred_element_type=jnp.float32) + b1_ref[...]
    h1 = jnp.maximum(h1, 0.0)

    # fc2 + relu
    h2 = jnp.dot(h1.astype(cd), w2_ref[...],
                 preferred_element_type=jnp.float32) + b2_ref[...]
    h2 = jnp.maximum(h2, 0.0)

    # fused mu/sigma heads: one matmul, one lane-dense [bt, 128] store.
    heads = jnp.dot(h2.astype(cd), wh_ref[...],
                    preferred_element_type=jnp.float32) + bh_ref[...]

    # Per-lane clamp: sigma lanes get [1e-6, 1.0], mu/junk lanes get [-inf, inf].
    heads = jnp.minimum(jnp.maximum(heads, lo_ref[...]), hi_ref[...])

    out_ref[...] = heads.astype(out_ref.dtype)


def prepare_params(params, *, compute_dtype=jnp.float32):
    """Pre-pack / pre-pad parameters ONCE (at init or after an optimizer step).

    params: dict with w1 [D_in,F1], b1 [F1], w2 [F1,F2], b2 [F2],
            wmu [F2,A], bmu [A], wsig [F2,A], bsig [A]  (all [in, out] layout).
    compute_dtype: dtype of the matmul operands (jnp.bfloat16 recommended on
            v6e/v7x); accumulation / biases / clamp stay in float32.
    """
    F1 = params["w1"].shape[1]
    F2 = params["w2"].shape[1]
    A = params["wmu"].shape[1]
    n_pad = max(128, _round_up(2 * A, 128))

    w_heads = jnp.zeros((F2, n_pad), jnp.float32)
    w_heads = w_heads.at[:, :A].set(params["wmu"]).at[:, A:2 * A].set(params["wsig"])
    b_heads = jnp.zeros((1, n_pad), jnp.float32)
    b_heads = b_heads.at[0, :A].set(params["bmu"]).at[0, A:2 * A].set(params["bsig"])

    lane = jnp.arange(n_pad)
    is_sigma = (lane >= A) & (lane < 2 * A)
    lo = jnp.where(is_sigma, 1e-6, -jnp.inf).astype(jnp.float32).reshape(1, n_pad)
    hi = jnp.where(is_sigma, 1.0, jnp.inf).astype(jnp.float32).reshape(1, n_pad)

    return {
        "w1": params["w1"].astype(compute_dtype),
        "b1": params["b1"].reshape(1, F1).astype(jnp.float32),
        "w2": params["w2"].astype(compute_dtype),
        "b2": params["b2"].reshape(1, F2).astype(jnp.float32),
        "w_heads": w_heads.astype(compute_dtype),
        "b_heads": b_heads,
        "lo": lo,
        "hi": hi,
        "n_actions": A,        # static
    }


def actor_forward(state, packed, *, b_tile=1024):
    """Run the fused actor MLP kernel.

    state:  [B, D_in] float32
    packed: output of prepare_params()
    returns (mu [B, A], sigma [B, A])
    """
    B, D_in = state.shape
    F1 = packed["w1"].shape[1]
    F2 = packed["w2"].shape[1]
    n_pad = packed["w_heads"].shape[1]
    A = packed["n_actions"]

    bt = _choose_batch_tile(B, b_tile)
    grid = (pl.cdiv(B, bt),)

    out = pl.pallas_call(
        actor_forward_kernel,
        out_shape=jax.ShapeDtypeStruct((B, n_pad), jnp.float32),
        grid=grid,
        in_specs=[
            pl.BlockSpec((bt, D_in), lambda i: (i, 0)),       # state tile
            pl.BlockSpec((D_in, F1), lambda i: (0, 0)),       # weights stay
            pl.BlockSpec((1, F1),    lambda i: (0, 0)),       #  VMEM-resident
            pl.BlockSpec((F1, F2),   lambda i: (0, 0)),       #  across grid
            pl.BlockSpec((1, F2),    lambda i: (0, 0)),
            pl.BlockSpec((F2, n_pad), lambda i: (0, 0)),
            pl.BlockSpec((1, n_pad),  lambda i: (0, 0)),
            pl.BlockSpec((1, n_pad),  lambda i: (0, 0)),      # clamp lo
            pl.BlockSpec((1, n_pad),  lambda i: (0, 0)),      # clamp hi
        ],
        out_specs=pl.BlockSpec((bt, n_pad), lambda i: (i, 0)),
        compiler_params=pltpu.CompilerParams(
            dimension_semantics=("parallel",),
        ),
    )(state, packed["w1"], packed["b1"], packed["w2"], packed["b2"],
      packed["w_heads"], packed["b_heads"], packed["lo"], packed["hi"])

    mu = out[:, :A]
    sigma = out[:, A:2 * A]
    return mu, sigma


def init_params(key, input_dims, fc1_dims, fc2_dims, n_actions):
    """Deterministic synthetic init matching nn.Linear shapes.

    PyTorch stores Linear weights as [out, in]; here we keep them as [in, out]
    (already transposed) so the kernel does x @ W + b.
    """
    ks = jax.random.split(key, 8)

    def unif(k, shape, fan_in):
        bound = 1.0 / jnp.sqrt(fan_in)
        return jax.random.uniform(k, shape, jnp.float32, -bound, bound)

    return {
        "w1":   unif(ks[0], (input_dims, fc1_dims), input_dims),
        "b1":   unif(ks[1], (fc1_dims,), input_dims),
        "w2":   unif(ks[2], (fc1_dims, fc2_dims), fc1_dims),
        "b2":   unif(ks[3], (fc2_dims,), fc1_dims),
        "wmu":  unif(ks[4], (fc2_dims, n_actions), fc2_dims),
        "bmu":  unif(ks[5], (n_actions,), fc2_dims),
        "wsig": unif(ks[6], (fc2_dims, n_actions), fc2_dims),
        "bsig": unif(ks[7], (n_actions,), fc2_dims),
    }


def reference_forward(state, params):
    h1 = jnp.maximum(state @ params["w1"] + params["b1"], 0.0)
    h2 = jnp.maximum(h1 @ params["w2"] + params["b2"], 0.0)
    mu = h2 @ params["wmu"] + params["bmu"]
    sigma = jnp.clip(h2 @ params["wsig"] + params["bsig"], 1e-6, 1.0)
    return mu, sigma


if __name__ == "__main__":
    key = jax.random.PRNGKey(0)
    k_state, k_params, k_big = jax.random.split(key, 3)

    # Small shapes consistent with the module: input_dims=32, fc1=fc2=256, n_actions=4
    B, D_IN, F1, F2, A = 2, 32, 256, 256, 4

    state = jax.random.normal(k_state, (B, D_IN), jnp.float32)
    raw = init_params(k_params, D_IN, F1, F2, A)

    # --- f32 path (default), tiny batch (single partial block) -------------
    packed = prepare_params(raw)
    mu, sigma = jax.block_until_ready(actor_forward(state, packed))
    mu_ref, sigma_ref = reference_forward(state, raw)
    assert mu.shape == (B, A) and sigma.shape == (B, A)
    assert jnp.allclose(mu, mu_ref, atol=1e-4, rtol=1e-4)
    assert jnp.allclose(sigma, sigma_ref, atol=1e-4, rtol=1e-4)
    assert jnp.all(sigma >= 1e-6) and jnp.all(sigma <= 1.0)

    # --- larger batch: multi-step "parallel" grid + ragged final block -----
    B2 = 300
    state_big = jax.random.normal(k_big, (B2, D_IN), jnp.float32)
    mu_b, sigma_b = jax.block_until_ready(actor_forward(state_big, packed))
    mu_br, sigma_br = reference_forward(state_big, raw)
    assert mu_b.shape == (B2, A) and sigma_b.shape == (B2, A)
    assert jnp.allclose(mu_b, mu_br, atol=1e-4, rtol=1e-4)
    assert jnp.allclose(sigma_b, sigma_br, atol=1e-4, rtol=1e-4)

    # --- bf16-weight path (MXU-native on v6e/v7x), f32 accumulation --------
    packed_bf16 = prepare_params(raw, compute_dtype=jnp.bfloat16)
    mu_h, sigma_h = jax.block_until_ready(actor_forward(state, packed_bf16))
    assert jnp.all(jnp.isfinite(mu_h)) and jnp.all(jnp.isfinite(sigma_h))
    assert jnp.all(sigma_h >= 1e-6) and jnp.all(sigma_h <= 1.0)
    assert jnp.max(jnp.abs(mu_h - mu_ref)) < 0.1

    # TODO(synk): sample_normal (rsample + tanh-squashed log_prob), the Adam
    # optimizer, and checkpoint I/O live outside the kernel; only forward()
    # is implemented in-kernel here.
    print("KERNEL_OK")
</pallas_src>

<mosaic_0001>
module attributes {stable_mosaic.version = 11 : i64} {
  func.func @actor_forward_kernel(%arg0: i32, %arg1: memref<8x32xf32, #tpu.memory_space<vmem>>, %arg2: memref<32x256xf32, #tpu.memory_space<vmem>>, %arg3: memref<1x256xf32, #tpu.memory_space<vmem>>, %arg4: memref<256x256xf32, #tpu.memory_space<vmem>>, %arg5: memref<1x256xf32, #tpu.memory_space<vmem>>, %arg6: memref<256x128xf32, #tpu.memory_space<vmem>>, %arg7: memref<1x128xf32, #tpu.memory_space<vmem>>, %arg8: memref<1x128xf32, #tpu.memory_space<vmem>>, %arg9: memref<1x128xf32, #tpu.memory_space<vmem>>, %arg10: memref<8x128xf32, #tpu.memory_space<vmem>>) attributes {dimension_semantics = [#tpu.dimension_semantics<parallel>], iteration_bounds = array<i64: 1>, scalar_prefetch = 0 : i64, scratch_operands = 0 : i64, tpu.core_type = #tpu.core_type<tc>, window_params = [{transform_indices = @transform_0, window_bounds = array<i64: 8, 32>}, {pipeline_mode = #tpu.pipeline_mode<synchronous>, transform_indices = @transform_1, window_bounds = array<i64: 32, 256>}, {pipeline_mode = #tpu.pipeline_mode<synchronous>, transform_indices = @transform_2, window_bounds = array<i64: 1, 256>}, {pipeline_mode = #tpu.pipeline_mode<synchronous>, transform_indices = @transform_3, window_bounds = array<i64: 256, 256>}, {pipeline_mode = #tpu.pipeline_mode<synchronous>, transform_indices = @transform_4, window_bounds = array<i64: 1, 256>}, {pipeline_mode = #tpu.pipeline_mode<synchronous>, transform_indices = @transform_5, window_bounds = array<i64: 256, 128>}, {pipeline_mode = #tpu.pipeline_mode<synchronous>, transform_indices = @transform_6, window_bounds = array<i64: 1, 128>}, {pipeline_mode = #tpu.pipeline_mode<synchronous>, transform_indices = @transform_7, window_bounds = array<i64: 1, 128>}, {pipeline_mode = #tpu.pipeline_mode<synchronous>, transform_indices = @transform_8, window_bounds = array<i64: 1, 128>}, {transform_indices = @transform_9, window_bounds = array<i64: 8, 128>}]} {
    %c0 = arith.constant 0 : index
    %c0_0 = arith.constant 0 : index
    %0 = vector.load %arg1[%c0, %c0_0] : memref<8x32xf32, #tpu.memory_space<vmem>>, vector<8x32xf32>
    %c0_1 = arith.constant 0 : index
    %c0_2 = arith.constant 0 : index
    %1 = vector.load %arg2[%c0_1, %c0_2] : memref<32x256xf32, #tpu.memory_space<vmem>>, vector<32x256xf32>
    %cst = arith.constant dense<0.000000e+00> : vector<8x256xf32>
    %2 = tpu.matmul %0, %1, %cst {dimension_numbers = #tpu.dot_dimension_numbers<[1], [0], [0], [1], [0, 0, 1, 1], [], []>} : vector<8x32xf32>, vector<32x256xf32>, vector<8x256xf32> -> vector<8x256xf32>
    %c0_3 = arith.constant 0 : index
    %c0_4 = arith.constant 0 : index
    %3 = vector.load %arg3[%c0_3, %c0_4] : memref<1x256xf32, #tpu.memory_space<vmem>>, vector<1x256xf32>
    %4 = vector.broadcast %3 : vector<1x256xf32> to vector<8x256xf32>
    %5 = arith.addf %2, %4 : vector<8x256xf32>
    %cst_5 = arith.constant 0.000000e+00 : f32
    %6 = vector.broadcast %cst_5 : f32 to vector<8x256xf32>
    %7 = arith.maximumf %5, %6 : vector<8x256xf32>
    %c0_6 = arith.constant 0 : index
    %c0_7 = arith.constant 0 : index
    %8 = vector.load %arg4[%c0_6, %c0_7] : memref<256x256xf32, #tpu.memory_space<vmem>>, vector<256x256xf32>
    %cst_8 = arith.constant dense<0.000000e+00> : vector<8x256xf32>
    %9 = tpu.matmul %7, %8, %cst_8 {dimension_numbers = #tpu.dot_dimension_numbers<[1], [0], [0], [1], [0, 0, 1, 1], [], []>} : vector<8x256xf32>, vector<256x256xf32>, vector<8x256xf32> -> vector<8x256xf32>
    %c0_9 = arith.constant 0 : index
    %c0_10 = arith.constant 0 : index
    %10 = vector.load %arg5[%c0_9, %c0_10] : memref<1x256xf32, #tpu.memory_space<vmem>>, vector<1x256xf32>
    %11 = vector.broadcast %10 : vector<1x256xf32> to vector<8x256xf32>
    %12 = arith.addf %9, %11 : vector<8x256xf32>
    %cst_11 = arith.constant 0.000000e+00 : f32
    %13 = vector.broadcast %cst_11 : f32 to vector<8x256xf32>
    %14 = arith.maximumf %12, %13 : vector<8x256xf32>
    %c0_12 = arith.constant 0 : index
    %c0_13 = arith.constant 0 : index
    %15 = vector.load %arg6[%c0_12, %c0_13] : memref<256x128xf32, #tpu.memory_space<vmem>>, vector<256x128xf32>
    %cst_14 = arith.constant dense<0.000000e+00> : vector<8x128xf32>
    %16 = tpu.matmul %14, %15, %cst_14 {dimension_numbers = #tpu.dot_dimension_numbers<[1], [0], [0], [1], [0, 0, 1, 1], [], []>} : vector<8x256xf32>, vector<256x128xf32>, vector<8x128xf32> -> vector<8x128xf32>
    %c0_15 = arith.constant 0 : index
    %c0_16 = arith.constant 0 : index
    %17 = vector.load %arg7[%c0_15, %c0_16] : memref<1x128xf32, #tpu.memory_space<vmem>>, vector<1x128xf32>
    %18 = vector.broadcast %17 : vector<1x128xf32> to vector<8x128xf32>
    %19 = arith.addf %16, %18 : vector<8x128xf32>
    %c0_17 = arith.constant 0 : index
    %c0_18 = arith.constant 0 : index
    %20 = vector.load %arg8[%c0_17, %c0_18] : memref<1x128xf32, #tpu.memory_space<vmem>>, vector<1x128xf32>
    %21 = vector.broadcast %20 : vector<1x128xf32> to vector<8x128xf32>
    %22 = arith.maximumf %19, %21 : vector<8x128xf32>
    %c0_19 = arith.constant 0 : index
    %c0_20 = arith.constant 0 : index
    %23 = vector.load %arg9[%c0_19, %c0_20] : memref<1x128xf32, #tpu.memory_space<vmem>>, vector<1x128xf32>
    %24 = vector.broadcast %23 : vector<1x128xf32> to vector<8x128xf32>
    %25 = arith.minimumf %22, %24 : vector<8x128xf32>
    %c0_21 = arith.constant 0 : index
    %c0_22 = arith.constant 0 : index
    %26 = vector.load %arg10[%c0_21, %c0_22] : memref<8x128xf32, #tpu.memory_space<vmem>>, vector<8x128xf32>
    tpu.vector_store %arg10[%c0_21, %c0_22], %25 {strides = array<i32>} : memref<8x128xf32, #tpu.memory_space<vmem>>, vector<8x128xf32>,
    return
  }
  func.func @transform_0(%arg0: i32) -> (i32, i32) {
    %c0_i32 = arith.constant 0 : i32
    %c0_i32_0 = arith.constant 0 : i32
    return %arg0, %c0_i32 : i32, i32
  }
  func.func @transform_1(%arg0: i32) -> (i32, i32) {
    %c0_i32 = arith.constant 0 : i32
    %c0_i32_0 = arith.constant 0 : i32
    %c0_i32_1 = arith.constant 0 : i32
    return %c0_i32, %c0_i32_0 : i32, i32
  }
  func.func @transform_2(%arg0: i32) -> (i32, i32) {
    %c0_i32 = arith.constant 0 : i32
    %c0_i32_0 = arith.constant 0 : i32
    %c0_i32_1 = arith.constant 0 : i32
    return %c0_i32, %c0_i32_0 : i32, i32
  }
  func.func @transform_3(%arg0: i32) -> (i32, i32) {
    %c0_i32 = arith.constant 0 : i32
    %c0_i32_0 = arith.constant 0 : i32
    %c0_i32_1 = arith.constant 0 : i32
    return %c0_i32, %c0_i32_0 : i32, i32
  }
  func.func @transform_4(%arg0: i32) -> (i32, i32) {
    %c0_i32 = arith.constant 0 : i32
    %c0_i32_0 = arith.constant 0 : i32
    %c0_i32_1 = arith.constant 0 : i32
    return %c0_i32, %c0_i32_0 : i32, i32
  }
  func.func @transform_5(%arg0: i32) -> (i32, i32) {
    %c0_i32 = arith.constant 0 : i32
    %c0_i32_0 = arith.constant 0 : i32
    %c0_i32_1 = arith.constant 0 : i32
    return %c0_i32, %c0_i32_0 : i32, i32
  }
  func.func @transform_6(%arg0: i32) -> (i32, i32) {
    %c0_i32 = arith.constant 0 : i32
    %c0_i32_0 = arith.constant 0 : i32
    %c0_i32_1 = arith.constant 0 : i32
    return %c0_i32, %c0_i32_0 : i32, i32
  }
  func.func @transform_7(%arg0: i32) -> (i32, i32) {
    %c0_i32 = arith.constant 0 : i32
    %c0_i32_0 = arith.constant 0 : i32
    %c0_i32_1 = arith.constant 0 : i32
    return %c0_i32, %c0_i32_0 : i32, i32
  }
  func.func @transform_8(%arg0: i32) -> (i32, i32) {
    %c0_i32 = arith.constant 0 : i32
    %c0_i32_0 = arith.constant 0 : i32
    %c0_i32_1 = arith.constant 0 : i32
    return %c0_i32, %c0_i32_0 : i32, i32
  }
  func.func @transform_9(%arg0: i32) -> (i32, i32) {
    %c0_i32 = arith.constant 0 : i32
    %c0_i32_0 = arith.constant 0 : i32
    return %arg0, %c0_i32 : i32, i32
  }
}

</mosaic_0001>

<bundles_post_ra>
// kernel: tpu_custom_call.1
= control target key start
LH: loop header
LB: loop body
LE: loop exit
PB: predicated region body
PF: predicated region fallthrough
CT: control target
= control target key end

     0   :  { %14 = vsyncpa [#allocation3], 0  ;;  %s909_s0 = inlined_call_operand.hbm [shape: f32[2,32], index: 0, kind: input, shape index: {}]   ;;  %s910_s1 = inlined_call_operand.hbm [shape: f32[32,256], index: 1, kind: input, shape index: {}]   ;;  %s911_s2 = inlined_call_operand.vmem [shape: f32[1,256], index: 2, kind: input, shape index: {}]   ;;  %s912_s3 = inlined_call_operand.hbm [shape: f32[256,256], index: 3, kind: input, shape index: {}]   ;;  %s913_s4 = inlined_call_operand.vmem [shape: f32[1,256], index: 4, kind: input, shape index: {}]   ;;  %s914_s5 = inlined_call_operand.hbm [shape: f32[256,128], index: 5, kind: input, shape index: {}]   ;;  %s915_s6 = inlined_call_operand.vmem [shape: f32[1,128], index: 6, kind: input, shape index: {}]   ;;  %s916_s7 = inlined_call_operand.vmem [shape: f32[1,128], index: 7, kind: input, shape index: {}]   ;;  %s917_s8 = inlined_call_operand.vmem [shape: f32[1,128], index: 8, kind: input, shape index: {}]   ;;  %s918_s9 = inlined_call_operand.hbm [shape: f32[2,128], index: 9, kind: output, shape index: {}]  }
   0x1   :  { %15 = vsyncpa [#allocation6], 0 }
   0x2   :  { %16 = vsyncpa [#allocation9], 0 }
   0x3   :  { %17 = vsyncpa [#allocation4], 0 }
   0x4   :  { %22 = vsyncadd [#allocation3], 96  ;;  %s753_s30 = smov [#allocation5]   ;;  %s635_s13 = scalar_lea.hbm %s910_s1, 1024 }
   0x5   :  { %s35_s10 = sshll.u32 %s753_s30, 4  ;;  %p636_p0 = scmp.ne.s32.totalorder %s910_s1, %s635_s13  ;;  %s36_s10 = int_to_ptr.vmem [resolvable:$true] %s35_s10 }
   0x6   :  { %p639_p1 = scmp.lt.u32.totalorder %s635_s13, %s910_s1 }
   0x8   :  { %p641_p2 = pnand %p639_p1, %p636_p0 }
   0xa   :  { %644 = shalt.err (!%p641_p2)
}
   0xb   :  { %s645_s18 = scalar_lea.vmem %s36_s10, 1024  ;;  %p650_p4 = scmp.lt.s32.totalorder %s36_s10, %s36_s10 }
   0xc   :  { %p646_p3 = scmp.ne.s32.totalorder %s36_s10, %s645_s18  ;;  %p651_p5 = scmp.lt.s32.totalorder %s645_s18, %s645_s18 }
   0xe   :  { %p652_p6 = por %p651_p5, %p650_p4 }
  0x10   :  { %p653_p7 = pnand %p652_p6, %p646_p3 }
  0x12   :  { %656 = shalt.err (!%p653_p7)
}
  0x13   :  { %s754_s19 = smov 256   ;;  %s755_s20 = smov 16  }
  0x14   :  { %41 = dma.hbm_to_vmem [thread:$0]  %s910_s1, 1024, %s36_s10, [#allocation6], %s754_s19, %s754_s19, %s755_s20  }
  0x15   :  { %s756_s23 = smov [#allocation2]   ;;  %s657_s27 = scalar_lea.hbm %s909_s0, 32 }
  0x16   :  { %s23_s24 = sshll.u32 %s756_s23, 4  ;;  %p658_p8 = scmp.ne.s32.totalorder %s909_s0, %s657_s27  ;;  %s24_s24 = int_to_ptr.vmem [resolvable:$true] %s23_s24 }
  0x17   :  { %p661_p9 = scmp.lt.u32.totalorder %s657_s27, %s909_s0 }
  0x19   :  { %p663_p10 = pnand %p661_p9, %p658_p8 }
  0x1b   :  { %666 = shalt.err (!%p663_p10)
}
  0x1c   :  { %s667_s12 = scalar_lea.vmem %s24_s24, 32  ;;  %s671_s1 = scalar_lea.vmem %s24_s24, 128 }
  0x1d   :  { %p668_p11 = scmp.ne.s32.totalorder %s24_s24, %s667_s12  ;;  %p672_p12 = scmp.lt.s32.totalorder %s24_s24, %s24_s24 }
  0x1e   :  { %p673_p13 = scmp.lt.s32.totalorder %s671_s1, %s667_s12 }
  0x20   :  { %p674_p0 = por %p673_p13, %p672_p12 }
  0x22   :  { %p675_p1 = pnand %p674_p0, %p668_p11 }
  0x24   :  { %678 = shalt.err (!%p675_p1)
}
  0x25   :  { %s757_s10 = smov 32   ;;  %s758_s13 = smov 2  }
  0x26   :  { %29 = dma.hbm_to_vmem [thread:$0]  %s909_s0, 32, %s24_s24, [#allocation3], %s757_s10, %s757_s10, %s758_s13  }
  0x27   :  { %s759_s16 = smov [#allocation7]   ;;  %s760_s18 = smov [#allocation8]  }
  0x28   :  { %s49_s17 = sshll.u32 %s759_s16, 4  ;;  %s63_s21 = sshll.u32 %s760_s18, 4  ;;  %s50_s17 = int_to_ptr.vmem [resolvable:$true] %s49_s17  ;;  %s845_s21 = int_to_ptr.vmem [resolvable:$true] %s63_s21 }
  0x29   :  { %s679_s25 = scalar_lea.hbm %s912_s3, 8192 }
  0x2a   :  { %p680_p2 = scmp.ne.s32.totalorder %s912_s3, %s679_s25  ;;  %p683_p3 = scmp.lt.u32.totalorder %s679_s25, %s912_s3 }
  0x2c   :  { %p685_p4 = pnand %p683_p3, %p680_p2 }
  0x2e   :  { %688 = shalt.err (!%p685_p4)
}
  0x2f   :  { %s689_s0 = scalar_lea.vmem %s50_s17, 8192  ;;  %p694_p6 = scmp.lt.s32.totalorder %s50_s17, %s50_s17 }
  0x30   :  { %p690_p5 = scmp.ne.s32.totalorder %s50_s17, %s689_s0  ;;  %p695_p7 = scmp.lt.s32.totalorder %s689_s0, %s689_s0 }
  0x32   :  { %p696_p8 = por %p695_p7, %p694_p6 }
  0x34   :  { %p697_p9 = pnand %p696_p8, %p690_p5 }
  0x36   :  { %700 = shalt.err (!%p697_p9)
}
  0x37   :  { %55 = dma.hbm_to_vmem [thread:$0]  %s912_s3, 8192, %s50_s17, [#allocation6], %s754_s19, %s754_s19, %s755_s20  }
  0x38   :  { %s701_s1 = scalar_lea.hbm %s914_s5, 4096 }
  0x39   :  { %p702_p10 = scmp.ne.s32.totalorder %s914_s5, %s701_s1  ;;  %p705_p11 = scmp.lt.u32.totalorder %s701_s1, %s914_s5 }
  0x3b   :  { %p707_p12 = pnand %p705_p11, %p702_p10 }
  0x3d   :  { %710 = shalt.err (!%p707_p12)
}
  0x3e   :  { %s711_s22 = scalar_lea.vmem %s845_s21, 4096  ;;  %p716_p0 = scmp.lt.s32.totalorder %s845_s21, %s845_s21 }
  0x3f   :  { %p712_p13 = scmp.ne.s32.totalorder %s845_s21, %s711_s22  ;;  %p717_p1 = scmp.lt.s32.totalorder %s711_s22, %s711_s22 }
  0x41   :  { %p718_p2 = por %p717_p1, %p716_p0 }
  0x43   :  { %p719_p3 = pnand %p718_p2, %p712_p13 }
  0x45   :  { %722 = shalt.err (!%p719_p3)
}
  0x46   :  { %s761_s3 = smov 128   ;;  %s762_s19 = smov 8  }
  0x47   :  { %69 = dma.hbm_to_vmem [thread:$0]  %s914_s5, 4096, %s845_s21, [#allocation9], %s761_s3, %s761_s3, %s762_s19  }
  0x48   :  { %745 = dma.done.wait [#allocation3], 128  }
  0x49   :  { %746 = vsyncadd [#allocation3], 4294967168 }
  0x4a   :  { %747 = dma.done.wait [#allocation6], 9216  }
  0x4b   :  { %748 = vsyncadd [#allocation6], 4294958080 }
  0x4c   :  { %749 = dma.done.wait [#allocation9], 4096  }
  0x4d   :  { %750 = vsyncadd [#allocation9], 4294963200  ;;  %v763_v0 = vmov 0.0   ;;  %v90_v1 = vld [vmem:[#allocation5 + $0x8] sm:$0xff]  ;;  %v92_v2 = vld [vmem:[#allocation5 + $0x18] sm:$0xff]  ;;  %vm109_vm0 = vcmask 261120  }
  0x4e   :  { %177 = vmatprep.mubr.f32.mxu0 %v763_v0  ;;  %v89_v3 = vld [vmem:[#allocation5] sm:$0xff]  ;;  %v519_v4 = vpack.c.bf16 %v92_v2, %v90_v1  ;;  %v91_v5 = vld [vmem:[#allocation5 + $0x10] sm:$0xff]  ;;  %v94_v6 = vld [vmem:[#allocation5 + $0x28] sm:$0xff] }
  0x4f   :  { %v96_v7 = vld [vmem:[#allocation5 + $0x38] sm:$0xff]  ;;  %v521_v8 = vpack.c.bf16 %v91_v5, %v89_v3  ;;  %v93_v10 = vld [vmem:[#allocation5 + $0x20] sm:$0xff]  ;;  %v95_v11 = vld [vmem:[#allocation5 + $0x30] sm:$0xff] }
  0x50   :  { %v523_v9 = vpack.c.bf16 %v96_v7, %v94_v6  ;;  %520 = vmatprep.subr.bf16.mxu0 %v519_v4  ;;  %v187_v12 = vld [vmem:[#allocation7 + $0x8] sm:$0xff]  ;;  %v189_v13 = vld [vmem:[#allocation7 + $0x18] sm:$0xff]  ;;  %v186_v14 = vld [vmem:[#allocation7] sm:$0xff]  ;;  %v525_v15 = vpack.c.bf16 %v95_v11, %v93_v10 }
  0x51   :  { %522 = vmatpush1.bf16.msra.mxu0 %v521_v8  ;;  %v527_v16 = vpack.c.bf16 %v189_v13, %v187_v12  ;;  %v188_v17 = vld [vmem:[#allocation7 + $0x10] sm:$0xff]  ;;  %v191_v18 = vld [vmem:[#allocation7 + $0x28] sm:$0xff]  ;;  %v193_v19 = vld [vmem:[#allocation7 + $0x38] sm:$0xff] }
  0x52   :  { %524 = vmatprep.subr.bf16.mxu0 %v523_v9  ;;  %v529_v20 = vpack.c.bf16 %v188_v17, %v186_v14  ;;  %v531_v21 = vpack.c.bf16 %v193_v19, %v191_v18  ;;  %v190_v22 = vld [vmem:[#allocation7 + $0x20] sm:$0xff]  ;;  %v192_v23 = vld [vmem:[#allocation7 + $0x30] sm:$0xff]  ;;  %v195_v24 = vld [vmem:[#allocation7 + $0x48] sm:$0xff] }
  0x53   :  { %528 = vmatprep.subr.bf16.mxu1 %v527_v16  ;;  %v197_v25 = vld [vmem:[#allocation7 + $0x58] sm:$0xff]  ;;  %v533_v26 = vpack.c.bf16 %v192_v23, %v190_v22  ;;  %v194_v29 = vld [vmem:[#allocation7 + $0x40] sm:$0xff]  ;;  %v196_v30 = vld [vmem:[#allocation7 + $0x50] sm:$0xff] }
  0x54   :  { %530 = vmatpush1.bf16.msra.mxu1 %v529_v20  ;;  %v88_v27 = vld [vmem:[#allocation2] sm:$0xff]  ;;  %v535_v28 = vpack.c.bf16 %v197_v25, %v195_v24  ;;  %v199_v31 = vld [vmem:[#allocation7 + $0x68] sm:$0xff]  ;;  %v537_v33 = vpack.c.bf16 %v196_v30, %v194_v29  ;;  %v198_v35 = vld [vmem:[#allocation7 + $0x60] sm:$0xff] }
  0x55   :  { %526 = vmatpush1.bf16.msra.mxu0 %v525_v15  ;;  %532 = vmatprep.subr.bf16.mxu1 %v531_v21  ;;  %v201_v32 = vld [vmem:[#allocation7 + $0x78] sm:$0xff]  ;;  %v200_v36 = vld [vmem:[#allocation7 + $0x70] sm:$0xff]  ;;  %v203_v37 = vld [vmem:[#allocation7 + $0x88] sm:$0xff] }
  0x56   :  { %v539_v34 = vpack.c.bf16 %v201_v32, %v199_v31  ;;  %v205_v38 = vld [vmem:[#allocation7 + $0x98] sm:$0xff]  ;;  %v541_v39 = vpack.c.bf16 %v200_v36, %v198_v35  ;;  %v202_v41 = vld [vmem:[#allocation7 + $0x80] sm:$0xff]  ;;  %v204_v42 = vld [vmem:[#allocation7 + $0x90] sm:$0xff] }
  0x57   :  { %v543_v40 = vpack.c.bf16 %v205_v38, %v203_v37  ;;  %v207_v43 = vld [vmem:[#allocation7 + $0xa8] sm:$0xff]  ;;  %v209_v44 = vld [vmem:[#allocation7 + $0xb8] sm:$0xff]  ;;  %v545_v45 = vpack.c.bf16 %v204_v42, %v202_v41  ;;  %v206_v47 = vld [vmem:[#allocation7 + $0xa0] sm:$0xff] }
  0x58   :  { %480 = vmatmul.mubr.msk.f32.vlgmr.msra.gmra.mrb[0].mxu0 %vm109_vm0, %v88_v27  ;;  %534 = vmatpush1.bf16.msra.mxu1 %v533_v26  ;;  %v547_v46 = vpack.c.bf16 %v209_v44, %v207_v43  ;;  %v208_v48 = vld [vmem:[#allocation7 + $0xb0] sm:$0xff]  ;;  %v211_v49 = vld [vmem:[#allocation7 + $0xc8] sm:$0xff]  ;;  %v213_v50 = vld [vmem:[#allocation7 + $0xd8] sm:$0xff] }
  0x59   :  { %536 = vmatprep.subr.bf16.mxu1 %v535_v28  ;;  %v549_v51 = vpack.c.bf16 %v208_v48, %v206_v47  ;;  %v551_v52 = vpack.c.bf16 %v213_v50, %v211_v49  ;;  %v210_v53 = vld [vmem:[#allocation7 + $0xc0] sm:$0xff]  ;;  %v212_v54 = vld [vmem:[#allocation7 + $0xd0] sm:$0xff]  ;;  %v215_v55 = vld [vmem:[#allocation7 + $0xe8] sm:$0xff] }
  0x5a   :  { %v217_v56 = vld [vmem:[#allocation7 + $0xf8] sm:$0xff]  ;;  %v553_v57 = vpack.c.bf16 %v212_v54, %v210_v53  ;;  %v214_v59 = vld [vmem:[#allocation7 + $0xe0] sm:$0xff]  ;;  %v216_v60 = vld [vmem:[#allocation7 + $0xf0] sm:$0xff] }
  0x5b   :  { %v555_v58 = vpack.c.bf16 %v217_v56, %v215_v55  ;;  %v219_v61 = vld [vmem:[#allocation7 + $0x108] sm:$0xff]  ;;  %v221_v62 = vld [vmem:[#allocation7 + $0x118] sm:$0xff]  ;;  %v557_v63 = vpack.c.bf16 %v216_v60, %v214_v59  ;;  %v218_v1 = vld [vmem:[#allocation7 + $0x100] sm:$0xff] }
  0x5c   :  { %538 = vmatpush1.bf16.msra.mxu1 %v537_v33  ;;  %v559_v0 = vpack.c.bf16 %v221_v62, %v219_v61  ;;  %v220_v2 = vld [vmem:[#allocation7 + $0x110] sm:$0xff]  ;;  %v223_v3 = vld [vmem:[#allocation7 + $0x128] sm:$0xff]  ;;  %v225_v4 = vld [vmem:[#allocation7 + $0x138] sm:$0xff] }
  0x5d   :  { %540 = vmatprep.subr.bf16.mxu1 %v539_v34  ;;  %v561_v5 = vpack.c.bf16 %v220_v2, %v218_v1  ;;  %v563_v6 = vpack.c.bf16 %v225_v4, %v223_v3  ;;  %v222_v7 = vld [vmem:[#allocation7 + $0x120] sm:$0xff]  ;;  %v224_v8 = vld [vmem:[#allocation7 + $0x130] sm:$0xff]  ;;  %v227_v9 = vld [vmem:[#allocation7 + $0x148] sm:$0xff] }
  0x5e   :  { %v229_v10 = vld [vmem:[#allocation7 + $0x158] sm:$0xff]  ;;  %v565_v11 = vpack.c.bf16 %v224_v8, %v222_v7  ;;  %v226_v13 = vld [vmem:[#allocation7 + $0x140] sm:$0xff]  ;;  %v228_v14 = vld [vmem:[#allocation7 + $0x150] sm:$0xff] }
  0x5f   :  { %v567_v12 = vpack.c.bf16 %v229_v10, %v227_v9  ;;  %v231_v15 = vld [vmem:[#allocation7 + $0x168] sm:$0xff]  ;;  %v233_v16 = vld [vmem:[#allocation7 + $0x178] sm:$0xff]  ;;  %v569_v17 = vpack.c.bf16 %v228_v14, %v226_v13  ;;  %v230_v19 = vld [vmem:[#allocation7 + $0x160] sm:$0xff] }
  0x60   :  { %542 = vmatpush1.bf16.msra.mxu1 %v541_v39  ;;  %v571_v18 = vpack.c.bf16 %v233_v16, %v231_v15  ;;  %v232_v20 = vld [vmem:[#allocation7 + $0x170] sm:$0xff]  ;;  %v235_v21 = vld [vmem:[#allocation7 + $0x188] sm:$0xff]  ;;  %v237_v22 = vld [vmem:[#allocation7 + $0x198] sm:$0xff] }
  0x61   :  { %544 = vmatprep.subr.bf16.mxu1 %v543_v40  ;;  %v573_v23 = vpack.c.bf16 %v232_v20, %v230_v19  ;;  %v575_v24 = vpack.c.bf16 %v237_v22, %v235_v21  ;;  %v234_v25 = vld [vmem:[#allocation7 + $0x180] sm:$0xff]  ;;  %v236_v26 = vld [vmem:[#allocation7 + $0x190] sm:$0xff]  ;;  %v239_v27 = vld [vmem:[#allocation7 + $0x1a8] sm:$0xff]  ;;  %v99_v21 = vlaneseq }
  0x62   :  { %v241_v28 = vld [vmem:[#allocation7 + $0x1b8] sm:$0xff]  ;;  %v577_v29 = vpack.c.bf16 %v236_v26, %v234_v25  ;;  %v238_v31 = vld [vmem:[#allocation7 + $0x1a0] sm:$0xff]  ;;  %v240_v32 = vld [vmem:[#allocation7 + $0x1b0] sm:$0xff] }
  0x63   :  { %v579_v30 = vpack.c.bf16 %v241_v28, %v239_v27  ;;  %v243_v33 = vld [vmem:[#allocation7 + $0x1c8] sm:$0xff]  ;;  %v245_v34 = vld [vmem:[#allocation7 + $0x1d8] sm:$0xff]  ;;  %v581_v35 = vpack.c.bf16 %v240_v32, %v238_v31  ;;  %v242_v37 = vld [vmem:[#allocation7 + $0x1c0] sm:$0xff]  ;;  %v100_v22 = vshrl.u32 %v99_v21, 7 }
  0x64   :  { %546 = vmatpush1.bf16.msra.mxu1 %v545_v45  ;;  %v583_v36 = vpack.c.bf16 %v245_v34, %v243_v33  ;;  %v244_v38 = vld [vmem:[#allocation7 + $0x1d0] sm:$0xff]  ;;  %v247_v40 = vld [vmem:[#allocation7 + $0x1e8] sm:$0xff]  ;;  %v249_v41 = vld [vmem:[#allocation7 + $0x1f8] sm:$0xff] }
  0x65   :  { %548 = vmatprep.subr.bf16.mxu1 %v547_v46  ;;  %v585_v39 = vpack.c.bf16 %v244_v38, %v242_v37  ;;  %v587_v42 = vpack.c.bf16 %v249_v41, %v247_v40  ;;  %v246_v43 = vld [vmem:[#allocation7 + $0x1e0] sm:$0xff]  ;;  %v248_v44 = vld [vmem:[#allocation7 + $0x1f0] sm:$0xff]  ;;  %v352_v47 = vld [vmem:[#allocation8 + $0x88] sm:$0xff]  ;;  %v105_v25 = vsub.s32 1, %v100_v22 }
  0x66   :  { %v589_v45 = vpack.c.bf16 %v248_v44, %v246_v43  ;;  %v351_v46 = vld [vmem:[#allocation8 + $0x80] sm:$0xff]  ;;  %v336_v50 = vld [vmem:[#allocation8 + $0x8] sm:$0xff]  ;;  %v337_v55 = vld [vmem:[#allocation8 + $0x10] sm:$0xff] }
  0x67   :  { %v335_v48 = vld [vmem:[#allocation8] sm:$0xff]  ;;  %v591_v49 = vpack.c.bf16 %v352_v47, %v351_v46  ;;  %v338_v56 = vld [vmem:[#allocation8 + $0x18] sm:$0xff]  ;;  %v340_v62 = vld [vmem:[#allocation8 + $0x28] sm:$0xff] }
  0x68   :  { %550 = vmatpush1.bf16.msra.mxu1 %v549_v51  ;;  %v353_v51 = vld [vmem:[#allocation8 + $0x90] sm:$0xff]  ;;  %v593_v53 = vpack.c.bf16 %v336_v50, %v335_v48  ;;  %v597_v59 = vpack.c.bf16 %v338_v56, %v337_v55  ;;  %v339_v61 = vld [vmem:[#allocation8 + $0x20] sm:$0xff]  ;;  %v342_v4 = vld [vmem:[#allocation8 + $0x38] sm:$0xff] }
  0x69   :  { %552 = vmatprep.subr.bf16.mxu1 %v551_v52  ;;  %v354_v52 = vld [vmem:[#allocation8 + $0x98] sm:$0xff]  ;;  %592 = vmatprep.subr.bf16.mxu0 %v591_v49  ;;  %v601_v1 = vpack.c.bf16 %v340_v62, %v339_v61  ;;  %v341_v3 = vld [vmem:[#allocation8 + $0x30] sm:$0xff]  ;;  %v343_v9 = vld [vmem:[#allocation8 + $0x40] sm:$0xff] }
  0x6a   :  { %v595_v54 = vpack.c.bf16 %v354_v52, %v353_v51  ;;  %594 = vmatpush3.bf16.msra.mxu0 %v593_v53  ;;  %v605_v7 = vpack.c.bf16 %v342_v4, %v341_v3  ;;  %v344_v10 = vld [vmem:[#allocation8 + $0x48] sm:$0xff]  ;;  %v345_v15 = vld [vmem:[#allocation8 + $0x50] sm:$0xff]  ;;  %v346_v16 = vld [vmem:[#allocation8 + $0x58] sm:$0xff] }
  0x6b   :  { %v609_v13 = vpack.c.bf16 %v344_v10, %v343_v9  ;;  %v613_v19 = vpack.c.bf16 %v346_v16, %v345_v15  ;;  %v347_v34 = vld [vmem:[#allocation8 + $0x60] sm:$0xff]  ;;  %v365_v37 = vld [vmem:[#allocation8 + $0xf0] sm:$0xff]  ;;  %v366_v38 = vld [vmem:[#allocation8 + $0xf8] sm:$0xff] }
  0x6c   :  { %554 = vmatpush1.bf16.msra.mxu1 %v553_v57  ;;  %v355_v57 = vld [vmem:[#allocation8 + $0xa0] sm:$0xff]  ;;  %596 = vmatprep.subr.bf16.mxu0 %v595_v54  ;;  %v349_v40 = vld [vmem:[#allocation8 + $0x70] sm:$0xff]  ;;  %v350_v41 = vld [vmem:[#allocation8 + $0x78] sm:$0xff] }
  0x6d   :  { %556 = vmatprep.subr.bf16.mxu1 %v555_v58  ;;  %v356_v58 = vld [vmem:[#allocation8 + $0xa8] sm:$0xff]  ;;  %v250_v43 = vld [vmem:[%s913_s4] sm:$0x3] }
  0x6e   :  { %v599_v60 = vpack.c.bf16 %v356_v58, %v355_v57  ;;  %598 = vmatpush3.bf16.msra.mxu0 %v597_v59  ;;  %v481_v53 = vld [vmem:[%s915_s6] ss:$0 sm:$0xff] }
  0x6f   :  { %v482_v56 = vld [vmem:[%s916_s7] ss:$0 sm:$0xff] }
  0x70   :  { %558 = vmatpush1.bf16.msra.mxu1 %v557_v63  ;;  %v357_v63 = vld [vmem:[#allocation8 + $0xb0] sm:$0xff]  ;;  %600 = vmatprep.subr.bf16.mxu0 %v599_v60  ;;  %v483_v58 = vld [vmem:[%s917_s8] ss:$0 sm:$0xff] }
  0x71   :  { %560 = vmatprep.subr.bf16.mxu1 %v559_v0  ;;  %v358_v0 = vld [vmem:[#allocation8 + $0xb8] sm:$0xff] }
  0x72   :  { %v603_v2 = vpack.c.bf16 %v358_v0, %v357_v63  ;;  %602 = vmatpush3.bf16.msra.mxu0 %v601_v1 }
  0x74   :  { %562 = vmatpush1.bf16.msra.mxu1 %v561_v5  ;;  %v359_v5 = vld [vmem:[#allocation8 + $0xc0] sm:$0xff]  ;;  %604 = vmatprep.subr.bf16.mxu0 %v603_v2 }
  0x75   :  { %564 = vmatprep.subr.bf16.mxu1 %v563_v6  ;;  %v360_v6 = vld [vmem:[#allocation8 + $0xc8] sm:$0xff] }
  0x76   :  { %v607_v8 = vpack.c.bf16 %v360_v6, %v359_v5  ;;  %606 = vmatpush3.bf16.msra.mxu0 %v605_v7 }
  0x78   :  { %566 = vmatpush1.bf16.msra.mxu1 %v565_v11  ;;  %v361_v11 = vld [vmem:[#allocation8 + $0xd0] sm:$0xff]  ;;  %608 = vmatprep.subr.bf16.mxu0 %v607_v8 }
  0x79   :  { %568 = vmatprep.subr.bf16.mxu1 %v567_v12  ;;  %v362_v12 = vld [vmem:[#allocation8 + $0xd8] sm:$0xff] }
  0x7a   :  { %v611_v14 = vpack.c.bf16 %v362_v12, %v361_v11  ;;  %610 = vmatpush3.bf16.msra.mxu0 %v609_v13 }
  0x7c   :  { %570 = vmatpush1.bf16.msra.mxu1 %v569_v17  ;;  %v363_v17 = vld [vmem:[#allocation8 + $0xe0] sm:$0xff]  ;;  %612 = vmatprep.subr.bf16.mxu0 %v611_v14 }
  0x7d   :  { %572 = vmatprep.subr.bf16.mxu1 %v571_v18  ;;  %v364_v18 = vld [vmem:[#allocation8 + $0xe8] sm:$0xff] }
  0x7e   :  { %v615_v20 = vpack.c.bf16 %v364_v18, %v363_v17  ;;  %614 = vmatpush3.bf16.msra.mxu0 %v613_v19 }
  0x80   :  { %574 = vmatpush1.bf16.msra.mxu1 %v573_v23  ;;  %616 = vmatprep.subr.bf16.mxu0 %v615_v20  ;;  %v101_v23 = vsub.s32 0, %v100_v22 }
  0x81   :  { %576 = vmatprep.subr.bf16.mxu1 %v575_v24  ;;  %v97_v24 = vld [vmem:[%s911_s2] sm:$0x3] }
  0x82   :  { %v102_v26 = vrot.slane %v97_v24, %v101_v23  ;;  %v106_v27 = vrot.slane %v97_v24, %v105_v25  ;;  %v255_v44 = vrot.slane %v250_v43, %v101_v23 }
  0x84   :  { %578 = vmatpush1.bf16.msra.mxu1 %v577_v29 }
  0x85   :  { %580 = vmatprep.subr.bf16.mxu1 %v579_v30 }
  0x88   :  { %582 = vmatpush1.bf16.msra.mxu1 %v581_v35  ;;  %v348_v35 = vld [vmem:[#allocation8 + $0x68] sm:$0xff] }
  0x89   :  { %584 = vmatprep.subr.bf16.mxu1 %v583_v36  ;;  %v617_v36 = vpack.c.bf16 %v348_v35, %v347_v34 }
  0x8b   :  { %618 = vmatpush3.bf16.msra.mxu0 %v617_v36 }
  0x8c   :  { %586 = vmatpush1.bf16.msra.mxu1 %v585_v39  ;;  %v619_v39 = vpack.c.bf16 %v366_v38, %v365_v37 }
  0x8d   :  { %588 = vmatprep.subr.bf16.mxu1 %v587_v42  ;;  %v621_v42 = vpack.c.bf16 %v350_v41, %v349_v40 }
  0x8e   :  { %620 = vmatprep.subr.bf16.mxu0 %v619_v39 }
  0x8f   :  { %622 = vmatpush3.bf16.msra.mxu0 %v621_v42 }
  0x90   :  { %590 = vmatpush1.bf16.msra.mxu1 %v589_v45  ;;  %v259_v45 = vrot.slane %v250_v43, %v105_v25 }
 0x12b   :  { %v179_v28 = vpop.f32.mrb[0].mxu0 }
 0x12c   :  { %v180_v29 = vadd.f32 %v179_v28, %v102_v26  ;;  %v181_v30 = vpop.f32.mrb[1].mxu0 }
 0x12d   :  { %v182_v31 = vadd.f32 %v181_v30, %v106_v27 }
 0x12e   :  { %v184_v33 = vmax.f32 %v180_v29, 0.0 }
 0x12f   :  { %v185_v32 = vmax.f32 %v182_v31, 0.0 }
 0x131   :  { %326 = vmatprep.mubr.f32.mxu1 %v185_v32 }
 0x132   :  { %327 = vmatmul.mubr.f32.vlgmr.msra.gmra.mrb[0].mxu1 %v184_v33 }
 0x205   :  { %v328_v46 = vpop.f32.mrb[0].mxu1 }
 0x206   :  { %v329_v47 = vadd.f32 %v328_v46, %v255_v44  ;;  %v330_v48 = vpop.f32.mrb[1].mxu1 }
 0x207   :  { %v331_v49 = vadd.f32 %v330_v48, %v259_v45 }
 0x208   :  { %v333_v51 = vmax.f32 %v329_v47, 0.0 }
 0x209   :  { %v334_v50 = vmax.f32 %v331_v49, 0.0 }
 0x20b   :  { %438 = vmatprep.mubr.f32.mxu0 %v334_v50 }
 0x20c   :  { %439 = vmatmul.mubr.f32.vlgmr.msra.gmra.mrb[2].mxu0 %v333_v51 }
 0x2df   :  { %v516_v52 = vpop.f32.mrb[2].mxu0 }
 0x2e0   :  { %v517_v54 = vpop.f32.mrb[3].mxu0 }
 0x2e1   :  { %v518_v55 = vadd.f32 %v517_v54, %v516_v52 }
 0x2e3   :  { %v441_v57 = vadd.f32 %v518_v55, %v481_v53 }
 0x2e5   :  { %v451_v59 = vmax.f32 %v441_v57, %v482_v56 }
 0x2e7   :  { %v459_v60 = vmin.f32 %v451_v59, %v483_v58 }
 0x2e9   :  { %460 = vst [vmem:[#allocation10] sm:$0xff] %v459_v60 }
 0x2ea   :  { %465 = vsyncadd [#allocation4], 96  ;;  %s764_s0 = smov [#allocation10]  }
 0x2eb   :  { %s466_s24 = sshll.u32 %s764_s0, 4  ;;  %s467_s24 = int_to_ptr.vmem [resolvable:$true] %s466_s24 }
 0x2ec   :  { %s723_s30 = scalar_lea.vmem %s467_s24, 32  ;;  %s727_s6 = scalar_lea.vmem %s467_s24, 128 }
 0x2ed   :  { %p724_p4 = scmp.ne.s32.totalorder %s467_s24, %s723_s30  ;;  %p728_p5 = scmp.lt.s32.totalorder %s467_s24, %s467_s24 }
 0x2ee   :  { %p729_p6 = scmp.lt.s32.totalorder %s727_s6, %s723_s30 }
 0x2f0   :  { %p730_p7 = por %p729_p6, %p728_p5 }
 0x2f2   :  { %p731_p8 = pnand %p730_p7, %p724_p4 }
 0x2f4   :  { %734 = shalt.err (!%p731_p8)
}
 0x2f5   :  { %s735_s12 = scalar_lea.hbm %s918_s9, 32 }
 0x2f6   :  { %p736_p9 = scmp.ne.s32.totalorder %s918_s9, %s735_s12  ;;  %p739_p10 = scmp.lt.u32.totalorder %s735_s12, %s918_s9 }
 0x2f8   :  { %p741_p11 = pnand %p739_p10, %p736_p9 }
 0x2fa   :  { %744 = shalt.err (!%p741_p11)
}
 0x2fb   :  { %472 = dma.vmem_to_hbm [thread:$0]  %s467_s24, 32, %s918_s9, [#allocation4], %s757_s10, %s757_s10, %s758_s13  }
 0x2fc   :  { %751 = dma.done.wait [#allocation4], 128  }
 0x2fd   :  { %752 = vsyncadd [#allocation4], 4294967168 }
 0x2fe   :  { %476 = vsyncpa [#allocation3], 1 }
 0x2ff   :  { %477 = vsyncpa [#allocation6], 1 }
 0x300   :  { %478 = vsyncpa [#allocation9], 1 }
 0x301   :  { %479 = vsyncpa [#allocation4], 1 }

</bundles_post_ra>
